<compile_context>
chip_gen: v7x
topology: tpu7x:2x2x1
jax: 0.10.0
libtpu: 0.0.40
codegen_flags: <defaults>
</compile_context>

<pallas_src>
import numpy as np
import jax
import jax.numpy as jnp
from jax.experimental import pallas as pl
from jax.experimental.pallas import tpu as pltpu


HIDDEN_DIMS = (256, 128, 64)
H2_PAD = 128          # layer-2 main/residual halves padded to a full lane width
LN_EPS = 1e-5
NEG_SLOPE = 0.01


def _round_up(x, m):
    return (x + m - 1) // m * m


# ---------------------------------------------------------------------------
# Kernel
# ---------------------------------------------------------------------------
def _actor_kernel(obs_ref,
                  w0_ref, b0_ref, g0_ref, be0_ref,
                  w1c_ref, b1c_ref, g1_ref, be1_ref,
                  w2c_ref, b2c_ref, g2_ref, be2_ref,
                  wo_ref, bo_ref,
                  out_ref):
    h1 = HIDDEN_DIMS[1]
    h2 = HIDDEN_DIMS[2]

    def leaky_relu(x):
        return jnp.maximum(x, NEG_SLOPE * x)

    def layer_norm(x, g, b):
        mu = jnp.mean(x, axis=-1, keepdims=True)
        d = x - mu
        var = jnp.mean(d * d, axis=-1, keepdims=True)
        return d * jax.lax.rsqrt(var + LN_EPS) * g + b

    x = obs_ref[...]  # (TB, obs_dim) f32

    # layer 0: Linear -> LayerNorm -> LeakyReLU        (obs_dim -> 256)
    h = jnp.dot(x.astype(jnp.bfloat16), w0_ref[...],
                preferred_element_type=jnp.float32) + b0_ref[...]
    h = leaky_relu(layer_norm(h, g0_ref[...], be0_ref[...]))

    # layer 1 + residual 0, fused into one 256-wide matmul, split at lane 128.
    y = jnp.dot(h.astype(jnp.bfloat16), w1c_ref[...],
                preferred_element_type=jnp.float32) + b1c_ref[...]
    main, res = y[:, :h1], y[:, h1:]
    h = leaky_relu(layer_norm(main, g1_ref[...], be1_ref[...])) + res

    # layer 2 + residual 1, fused and lane-padded (each half 64 -> 128), split
    # at lane 128.  Padded lanes of `main`/`res` are exactly zero (zero weight
    # columns + zero bias), so LN stats over the real 64 lanes are exact.
    y = jnp.dot(h.astype(jnp.bfloat16), w2c_ref[...],
                preferred_element_type=jnp.float32) + b2c_ref[...]
    main, res = y[:, :H2_PAD], y[:, H2_PAD:]
    lane = jax.lax.broadcasted_iota(jnp.int32, (1, H2_PAD), 1)
    mask = (lane < h2).astype(jnp.float32)
    mu = jnp.sum(main, axis=-1, keepdims=True) * (1.0 / h2)      # pad lanes = 0
    d = main - mu
    dm = d * mask
    var = jnp.sum(dm * dm, axis=-1, keepdims=True) * (1.0 / h2)
    normed = d * jax.lax.rsqrt(var + LN_EPS) * g2_ref[...] + be2_ref[...]
    h = leaky_relu(normed) + res          # padded lanes stay exactly zero

    # output layer (K=128, zero rows for the padded lanes) + tanh
    out_ref[...] = jnp.tanh(
        jnp.dot(h.astype(jnp.bfloat16), wo_ref[...],
                preferred_element_type=jnp.float32) + bo_ref[...])


# ---------------------------------------------------------------------------
# Parameter prep (done once, outside the kernel)
# ---------------------------------------------------------------------------
def init_actor_params(key, obs_dim, action_dim, hidden_dims=HIDDEN_DIMS):
    """Matches the PyTorch module init: orthogonal(gain=sqrt(2)) weights,
    zero biases, LayerNorm gamma=1 / beta=0. Linear weights stored
    pre-transposed as (in_dim, out_dim)."""
    ortho = jax.nn.initializers.orthogonal(scale=float(np.sqrt(2.0)))
    keys = jax.random.split(key, 8)
    p = {}

    dims = [obs_dim] + list(hidden_dims)
    for i in range(len(hidden_dims)):
        w_pt = ortho(keys[i], (dims[i + 1], dims[i]), jnp.float32)  # (out, in)
        p[f"w{i}"] = jnp.asarray(w_pt).T                            # (in, out)
        p[f"b{i}"] = jnp.zeros((1, dims[i + 1]), jnp.float32)
        p[f"g{i}"] = jnp.ones((1, dims[i + 1]), jnp.float32)
        p[f"be{i}"] = jnp.zeros((1, dims[i + 1]), jnp.float32)

    for i in range(len(hidden_dims) - 1):
        w_pt = ortho(keys[4 + i], (hidden_dims[i + 1], hidden_dims[i]), jnp.float32)
        p[f"wr{i}"] = jnp.asarray(w_pt).T
        p[f"br{i}"] = jnp.zeros((1, hidden_dims[i + 1]), jnp.float32)

    w_pt = ortho(keys[7], (action_dim, hidden_dims[-1]), jnp.float32)
    p["wo"] = jnp.asarray(w_pt).T
    p["bo"] = jnp.zeros((1, action_dim), jnp.float32)
    return p


def prepare_actor_params(p, obs_dim, action_dim):
    """Fuse residual weights into the main-path matmuls (concat along the
    output axis), lane-pad layer 2 / output weights, cast matmul weights to
    bf16 (biases / LN params stay f32)."""
    h0, h1, h2 = HIDDEN_DIMS
    bf16 = jnp.bfloat16

    # layer 1 + residual 0 fused along the output axis: (256, 128+128)
    w1c = jnp.concatenate([p["w1"], p["wr0"]], axis=1)
    b1c = jnp.concatenate([p["b1"], p["br0"]], axis=1)

    # layer 2 + residual 1 fused; each 64-wide half padded to 128 lanes.
    w2c = jnp.zeros((h1, 2 * H2_PAD), jnp.float32)
    w2c = w2c.at[:, :h2].set(p["w2"]).at[:, H2_PAD:H2_PAD + h2].set(p["wr1"])
    b2c = jnp.zeros((1, 2 * H2_PAD), jnp.float32)
    b2c = b2c.at[:, :h2].set(p["b2"]).at[:, H2_PAD:H2_PAD + h2].set(p["br1"])
    g2 = jnp.zeros((1, H2_PAD), jnp.float32).at[:, :h2].set(p["g2"])
    be2 = jnp.zeros((1, H2_PAD), jnp.float32).at[:, :h2].set(p["be2"])

    # output weight padded with zero rows (64 -> 128); exact since padded
    # activation lanes are zero.
    wo = jnp.zeros((H2_PAD, action_dim), jnp.float32).at[:h2].set(p["wo"])

    return dict(
        w0=p["w0"].astype(bf16), b0=p["b0"], g0=p["g0"], be0=p["be0"],
        w1c=w1c.astype(bf16), b1c=b1c, g1=p["g1"], be1=p["be1"],
        w2c=w2c.astype(bf16), b2c=b2c, g2=g2, be2=be2,
        wo=wo.astype(bf16), bo=p["bo"],
        obs_dim=obs_dim, action_dim=action_dim,
    )


# ---------------------------------------------------------------------------
# Wrapper
# ---------------------------------------------------------------------------
def actor_forward(obs, prep, *, tb=2048):
    """obs: (B, obs_dim) f32. prep: output of prepare_actor_params."""
    B, obs_dim = obs.shape
    action_dim = prep["action_dim"]
    obs = obs.astype(jnp.float32)

    # Batch tile: multiple of 8 (sublane), capped at `tb` and at ceil(B/2) so
    # the grid has >=2 steps whenever B allows (lets v7x's two TensorCores
    # split the batch). TB=2048 keeps per-step VMEM well under the default
    # 32 MiB scoped limit (weights ~0.3 MiB bf16, activations a few MiB).
    half = _round_up(max(1, (B + 1) // 2), 8)
    tb_eff = max(8, min(tb, half))
    bp = _round_up(B, tb_eff)
    if bp != B:
        obs = jnp.pad(obs, ((0, bp - B), (0, 0)))

    weight_args = (
        prep["w0"], prep["b0"], prep["g0"], prep["be0"],
        prep["w1c"], prep["b1c"], prep["g1"], prep["be1"],
        prep["w2c"], prep["b2c"], prep["g2"], prep["be2"],
        prep["wo"], prep["bo"],
    )

    def resident(a):
        # Whole array resident in VMEM for every grid step.
        return pl.BlockSpec(a.shape, lambda i: (0,) * a.ndim)

    grid = (bp // tb_eff,)
    # obs / out are lane-unpadded: last block dim equals the full array dim
    # (legal), avoiding wrapper-side pad/slice HBM passes and 16x padded-output
    # write amplification.
    in_specs = [pl.BlockSpec((tb_eff, obs_dim), lambda i: (i, 0))]
    in_specs += [resident(a) for a in weight_args]
    out_spec = pl.BlockSpec((tb_eff, action_dim), lambda i: (i, 0))

    h0, h1, _ = HIDDEN_DIMS
    weight_bytes = int(sum(int(np.prod(a.shape)) * a.dtype.itemsize
                           for a in weight_args))
    cost = pl.CostEstimate(
        flops=2 * bp * (obs_dim * h0 + h0 * 2 * h1 + h1 * 2 * H2_PAD
                        + H2_PAD * action_dim),
        transcendentals=bp * (3 + action_dim),
        bytes_accessed=bp * (obs_dim + action_dim) * 4 + weight_bytes,
    )

    out_p = pl.pallas_call(
        _actor_kernel,
        out_shape=jax.ShapeDtypeStruct((bp, action_dim), jnp.float32),
        grid=grid,
        in_specs=in_specs,
        out_specs=out_spec,
        compiler_params=pltpu.CompilerParams(
            dimension_semantics=("parallel",)),   # megacore split on v7x
        cost_estimate=cost,
    )(obs, *weight_args)

    return out_p if bp == B else out_p[:B]


# ---------------------------------------------------------------------------
# Pure-JAX reference (un-fused, un-padded, f32) for correctness checking
# ---------------------------------------------------------------------------
def actor_forward_ref(obs, p):
    def lin(x, w, b):
        return x @ w + b

    def ln(x, g, b):
        mu = jnp.mean(x, axis=-1, keepdims=True)
        var = jnp.mean((x - mu) ** 2, axis=-1, keepdims=True)
        return (x - mu) / jnp.sqrt(var + LN_EPS) * g + b

    def lrelu(x):
        return jnp.where(x >= 0, x, NEG_SLOPE * x)

    x = lrelu(ln(lin(obs, p["w0"], p["b0"]), p["g0"], p["be0"]))
    identity = x
    x = lrelu(ln(lin(x, p["w1"], p["b1"]), p["g1"], p["be1"]))
    x = x + lin(identity, p["wr0"], p["br0"])
    identity = x
    x = lrelu(ln(lin(x, p["w2"], p["b2"]), p["g2"], p["be2"]))
    x = x + lin(identity, p["wr1"], p["br1"])
    return jnp.tanh(lin(x, p["wo"], p["bo"]))


if __name__ == "__main__":
    key = jax.random.PRNGKey(0)
    k_obs, k_params = jax.random.split(key)

    batch, obs_dim, action_dim = 8, 32, 8
    obs = jax.random.normal(k_obs, (batch, obs_dim), jnp.float32)
    params = init_actor_params(k_params, obs_dim, action_dim)
    prep = prepare_actor_params(params, obs_dim, action_dim)

    out = jax.block_until_ready(actor_forward(obs, prep))
    ref = jax.block_until_ready(actor_forward_ref(obs, params))

    # bf16 matmul operands (f32 accumulate) -> relaxed tolerance vs f32 ref.
    np.testing.assert_allclose(np.asarray(out), np.asarray(ref),
                               rtol=3e-2, atol=3e-2)
    print("KERNEL_OK")
</pallas_src>

<mosaic_0001>
module attributes {stable_mosaic.version = 11 : i64} {
  func.func @_actor_kernel(%arg0: i32, %arg1: memref<8x32xf32, #tpu.memory_space<vmem>>, %arg2: memref<32x256xbf16, #tpu.memory_space<vmem>>, %arg3: memref<1x256xf32, #tpu.memory_space<vmem>>, %arg4: memref<1x256xf32, #tpu.memory_space<vmem>>, %arg5: memref<1x256xf32, #tpu.memory_space<vmem>>, %arg6: memref<256x256xbf16, #tpu.memory_space<vmem>>, %arg7: memref<1x256xf32, #tpu.memory_space<vmem>>, %arg8: memref<1x128xf32, #tpu.memory_space<vmem>>, %arg9: memref<1x128xf32, #tpu.memory_space<vmem>>, %arg10: memref<128x256xbf16, #tpu.memory_space<vmem>>, %arg11: memref<1x256xf32, #tpu.memory_space<vmem>>, %arg12: memref<1x128xf32, #tpu.memory_space<vmem>>, %arg13: memref<1x128xf32, #tpu.memory_space<vmem>>, %arg14: memref<128x8xbf16, #tpu.memory_space<vmem>>, %arg15: memref<1x8xf32, #tpu.memory_space<vmem>>, %arg16: memref<8x8xf32, #tpu.memory_space<vmem>>) attributes {dimension_semantics = [#tpu.dimension_semantics<parallel>], iteration_bounds = array<i64: 1>, scalar_prefetch = 0 : i64, scratch_operands = 0 : i64, tpu.core_type = #tpu.core_type<tc>, window_params = [{transform_indices = @transform_0, window_bounds = array<i64: 8, 32>}, {pipeline_mode = #tpu.pipeline_mode<synchronous>, transform_indices = @transform_1, window_bounds = array<i64: 32, 256>}, {pipeline_mode = #tpu.pipeline_mode<synchronous>, transform_indices = @transform_2, window_bounds = array<i64: 1, 256>}, {pipeline_mode = #tpu.pipeline_mode<synchronous>, transform_indices = @transform_3, window_bounds = array<i64: 1, 256>}, {pipeline_mode = #tpu.pipeline_mode<synchronous>, transform_indices = @transform_4, window_bounds = array<i64: 1, 256>}, {pipeline_mode = #tpu.pipeline_mode<synchronous>, transform_indices = @transform_5, window_bounds = array<i64: 256, 256>}, {pipeline_mode = #tpu.pipeline_mode<synchronous>, transform_indices = @transform_6, window_bounds = array<i64: 1, 256>}, {pipeline_mode = #tpu.pipeline_mode<synchronous>, transform_indices = @transform_7, window_bounds = array<i64: 1, 128>}, {pipeline_mode = #tpu.pipeline_mode<synchronous>, transform_indices = @transform_8, window_bounds = array<i64: 1, 128>}, {pipeline_mode = #tpu.pipeline_mode<synchronous>, transform_indices = @transform_9, window_bounds = array<i64: 128, 256>}, {pipeline_mode = #tpu.pipeline_mode<synchronous>, transform_indices = @transform_10, window_bounds = array<i64: 1, 256>}, {pipeline_mode = #tpu.pipeline_mode<synchronous>, transform_indices = @transform_11, window_bounds = array<i64: 1, 128>}, {pipeline_mode = #tpu.pipeline_mode<synchronous>, transform_indices = @transform_12, window_bounds = array<i64: 1, 128>}, {pipeline_mode = #tpu.pipeline_mode<synchronous>, transform_indices = @transform_13, window_bounds = array<i64: 128, 8>}, {pipeline_mode = #tpu.pipeline_mode<synchronous>, transform_indices = @transform_14, window_bounds = array<i64: 1, 8>}, {transform_indices = @transform_15, window_bounds = array<i64: 8, 8>}]} {
    %c0 = arith.constant 0 : index
    %c0_0 = arith.constant 0 : index
    %0 = vector.load %arg1[%c0, %c0_0] : memref<8x32xf32, #tpu.memory_space<vmem>>, vector<8x32xf32>
    %1 = arith.truncf %0 : vector<8x32xf32> to vector<8x32xbf16>
    %c0_1 = arith.constant 0 : index
    %c0_2 = arith.constant 0 : index
    %2 = vector.load %arg2[%c0_1, %c0_2] : memref<32x256xbf16, #tpu.memory_space<vmem>>, vector<32x256xbf16>
    %cst = arith.constant dense<0.000000e+00> : vector<8x256xf32>
    %3 = tpu.matmul %1, %2, %cst {dimension_numbers = #tpu.dot_dimension_numbers<[1], [0], [0], [1], [0, 0, 1, 1], [], []>} : vector<8x32xbf16>, vector<32x256xbf16>, vector<8x256xf32> -> vector<8x256xf32>
    %c0_3 = arith.constant 0 : index
    %c0_4 = arith.constant 0 : index
    %4 = vector.load %arg3[%c0_3, %c0_4] : memref<1x256xf32, #tpu.memory_space<vmem>>, vector<1x256xf32>
    %5 = vector.broadcast %4 : vector<1x256xf32> to vector<8x256xf32>
    %6 = arith.addf %3, %5 : vector<8x256xf32>
    %c0_5 = arith.constant 0 : index
    %c0_6 = arith.constant 0 : index
    %7 = vector.load %arg4[%c0_5, %c0_6] : memref<1x256xf32, #tpu.memory_space<vmem>>, vector<1x256xf32>
    %c0_7 = arith.constant 0 : index
    %c0_8 = arith.constant 0 : index
    %8 = vector.load %arg5[%c0_7, %c0_8] : memref<1x256xf32, #tpu.memory_space<vmem>>, vector<1x256xf32>
    %cst_9 = arith.constant dense<0.000000e+00> : vector<8xf32>
    %9 = vector.multi_reduction <add>, %6, %cst_9 [1] : vector<8x256xf32> to vector<8xf32>
    %10 = vector.shape_cast %9 : vector<8xf32> to vector<8x1xf32>
    %cst_10 = arith.constant 2.560000e+02 : f32
    %11 = vector.broadcast %cst_10 : f32 to vector<8x1xf32>
    %12 = arith.divf %10, %11 : vector<8x1xf32>
    %13 = vector.broadcast %12 : vector<8x1xf32> to vector<8x256xf32>
    %14 = arith.subf %6, %13 : vector<8x256xf32>
    %15 = arith.mulf %14, %14 : vector<8x256xf32>
    %cst_11 = arith.constant dense<0.000000e+00> : vector<8xf32>
    %16 = vector.multi_reduction <add>, %15, %cst_11 [1] : vector<8x256xf32> to vector<8xf32>
    %17 = vector.shape_cast %16 : vector<8xf32> to vector<8x1xf32>
    %cst_12 = arith.constant 2.560000e+02 : f32
    %18 = vector.broadcast %cst_12 : f32 to vector<8x1xf32>
    %19 = arith.divf %17, %18 : vector<8x1xf32>
    %cst_13 = arith.constant 9.99999974E-6 : f32
    %20 = vector.broadcast %cst_13 : f32 to vector<8x1xf32>
    %21 = arith.addf %19, %20 : vector<8x1xf32>
    %22 = math.rsqrt %21 : vector<8x1xf32>
    %23 = vector.broadcast %22 : vector<8x1xf32> to vector<8x256xf32>
    %24 = arith.mulf %14, %23 : vector<8x256xf32>
    %25 = vector.broadcast %7 : vector<1x256xf32> to vector<8x256xf32>
    %26 = arith.mulf %24, %25 : vector<8x256xf32>
    %27 = vector.broadcast %8 : vector<1x256xf32> to vector<8x256xf32>
    %28 = arith.addf %26, %27 : vector<8x256xf32>
    %cst_14 = arith.constant 0.00999999977 : f32
    %29 = vector.broadcast %cst_14 : f32 to vector<8x256xf32>
    %30 = arith.mulf %29, %28 : vector<8x256xf32>
    %31 = arith.maximumf %28, %30 : vector<8x256xf32>
    %32 = arith.truncf %31 : vector<8x256xf32> to vector<8x256xbf16>
    %c0_15 = arith.constant 0 : index
    %c0_16 = arith.constant 0 : index
    %33 = vector.load %arg6[%c0_15, %c0_16] : memref<256x256xbf16, #tpu.memory_space<vmem>>, vector<256x256xbf16>
    %cst_17 = arith.constant dense<0.000000e+00> : vector<8x256xf32>
    %34 = tpu.matmul %32, %33, %cst_17 {dimension_numbers = #tpu.dot_dimension_numbers<[1], [0], [0], [1], [0, 0, 1, 1], [], []>} : vector<8x256xbf16>, vector<256x256xbf16>, vector<8x256xf32> -> vector<8x256xf32>
    %c0_18 = arith.constant 0 : index
    %c0_19 = arith.constant 0 : index
    %35 = vector.load %arg7[%c0_18, %c0_19] : memref<1x256xf32, #tpu.memory_space<vmem>>, vector<1x256xf32>
    %36 = vector.broadcast %35 : vector<1x256xf32> to vector<8x256xf32>
    %37 = arith.addf %34, %36 : vector<8x256xf32>
    %38 = vector.extract_strided_slice %37 {offsets = [0, 0], sizes = [8, 128], strides = [1, 1]} : vector<8x256xf32> to vector<8x128xf32>
    %39 = vector.extract_strided_slice %37 {offsets = [0, 128], sizes = [8, 128], strides = [1, 1]} : vector<8x256xf32> to vector<8x128xf32>
    %c0_20 = arith.constant 0 : index
    %c0_21 = arith.constant 0 : index
    %40 = vector.load %arg8[%c0_20, %c0_21] : memref<1x128xf32, #tpu.memory_space<vmem>>, vector<1x128xf32>
    %c0_22 = arith.constant 0 : index
    %c0_23 = arith.constant 0 : index
    %41 = vector.load %arg9[%c0_22, %c0_23] : memref<1x128xf32, #tpu.memory_space<vmem>>, vector<1x128xf32>
    %cst_24 = arith.constant dense<0.000000e+00> : vector<8xf32>
    %42 = vector.multi_reduction <add>, %38, %cst_24 [1] : vector<8x128xf32> to vector<8xf32>
    %43 = vector.shape_cast %42 : vector<8xf32> to vector<8x1xf32>
    %cst_25 = arith.constant 1.280000e+02 : f32
    %44 = vector.broadcast %cst_25 : f32 to vector<8x1xf32>
    %45 = arith.divf %43, %44 : vector<8x1xf32>
    %46 = vector.broadcast %45 : vector<8x1xf32> to vector<8x128xf32>
    %47 = arith.subf %38, %46 : vector<8x128xf32>
    %48 = arith.mulf %47, %47 : vector<8x128xf32>
    %cst_26 = arith.constant dense<0.000000e+00> : vector<8xf32>
    %49 = vector.multi_reduction <add>, %48, %cst_26 [1] : vector<8x128xf32> to vector<8xf32>
    %50 = vector.shape_cast %49 : vector<8xf32> to vector<8x1xf32>
    %cst_27 = arith.constant 1.280000e+02 : f32
    %51 = vector.broadcast %cst_27 : f32 to vector<8x1xf32>
    %52 = arith.divf %50, %51 : vector<8x1xf32>
    %cst_28 = arith.constant 9.99999974E-6 : f32
    %53 = vector.broadcast %cst_28 : f32 to vector<8x1xf32>
    %54 = arith.addf %52, %53 : vector<8x1xf32>
    %55 = math.rsqrt %54 : vector<8x1xf32>
    %56 = vector.broadcast %55 : vector<8x1xf32> to vector<8x128xf32>
    %57 = arith.mulf %47, %56 : vector<8x128xf32>
    %58 = vector.broadcast %40 : vector<1x128xf32> to vector<8x128xf32>
    %59 = arith.mulf %57, %58 : vector<8x128xf32>
    %60 = vector.broadcast %41 : vector<1x128xf32> to vector<8x128xf32>
    %61 = arith.addf %59, %60 : vector<8x128xf32>
    %cst_29 = arith.constant 0.00999999977 : f32
    %62 = vector.broadcast %cst_29 : f32 to vector<8x128xf32>
    %63 = arith.mulf %62, %61 : vector<8x128xf32>
    %64 = arith.maximumf %61, %63 : vector<8x128xf32>
    %65 = arith.addf %64, %39 : vector<8x128xf32>
    %66 = arith.truncf %65 : vector<8x128xf32> to vector<8x128xbf16>
    %c0_30 = arith.constant 0 : index
    %c0_31 = arith.constant 0 : index
    %67 = vector.load %arg10[%c0_30, %c0_31] : memref<128x256xbf16, #tpu.memory_space<vmem>>, vector<128x256xbf16>
    %cst_32 = arith.constant dense<0.000000e+00> : vector<8x256xf32>
    %68 = tpu.matmul %66, %67, %cst_32 {dimension_numbers = #tpu.dot_dimension_numbers<[1], [0], [0], [1], [0, 0, 1, 1], [], []>} : vector<8x128xbf16>, vector<128x256xbf16>, vector<8x256xf32> -> vector<8x256xf32>
    %c0_33 = arith.constant 0 : index
    %c0_34 = arith.constant 0 : index
    %69 = vector.load %arg11[%c0_33, %c0_34] : memref<1x256xf32, #tpu.memory_space<vmem>>, vector<1x256xf32>
    %70 = vector.broadcast %69 : vector<1x256xf32> to vector<8x256xf32>
    %71 = arith.addf %68, %70 : vector<8x256xf32>
    %72 = vector.extract_strided_slice %71 {offsets = [0, 0], sizes = [8, 128], strides = [1, 1]} : vector<8x256xf32> to vector<8x128xf32>
    %73 = vector.extract_strided_slice %71 {offsets = [0, 128], sizes = [8, 128], strides = [1, 1]} : vector<8x256xf32> to vector<8x128xf32>
    %74 = tpu.iota {dimensions = array<i32: 1>} : vector<1x128xi32>
    %c64_i32 = arith.constant 64 : i32
    %75 = vector.broadcast %c64_i32 : i32 to vector<1x128xi32>
    %76 = arith.cmpi slt, %74, %75 : vector<1x128xi32>
    %77 = arith.extui %76 : vector<1x128xi1> to vector<1x128xi32>
    %78 = arith.sitofp %77 : vector<1x128xi32> to vector<1x128xf32>
    %cst_35 = arith.constant dense<0.000000e+00> : vector<8xf32>
    %79 = vector.multi_reduction <add>, %72, %cst_35 [1] : vector<8x128xf32> to vector<8xf32>
    %80 = vector.shape_cast %79 : vector<8xf32> to vector<8x1xf32>
    %cst_36 = arith.constant 1.562500e-02 : f32
    %81 = vector.broadcast %cst_36 : f32 to vector<8x1xf32>
    %82 = arith.mulf %80, %81 : vector<8x1xf32>
    %83 = vector.broadcast %82 : vector<8x1xf32> to vector<8x128xf32>
    %84 = arith.subf %72, %83 : vector<8x128xf32>
    %85 = vector.broadcast %78 : vector<1x128xf32> to vector<8x128xf32>
    %86 = arith.mulf %84, %85 : vector<8x128xf32>
    %87 = arith.mulf %86, %86 : vector<8x128xf32>
    %cst_37 = arith.constant dense<0.000000e+00> : vector<8xf32>
    %88 = vector.multi_reduction <add>, %87, %cst_37 [1] : vector<8x128xf32> to vector<8xf32>
    %89 = vector.shape_cast %88 : vector<8xf32> to vector<8x1xf32>
    %cst_38 = arith.constant 1.562500e-02 : f32
    %90 = vector.broadcast %cst_38 : f32 to vector<8x1xf32>
    %91 = arith.mulf %89, %90 : vector<8x1xf32>
    %cst_39 = arith.constant 9.99999974E-6 : f32
    %92 = vector.broadcast %cst_39 : f32 to vector<8x1xf32>
    %93 = arith.addf %91, %92 : vector<8x1xf32>
    %94 = math.rsqrt %93 : vector<8x1xf32>
    %95 = vector.broadcast %94 : vector<8x1xf32> to vector<8x128xf32>
    %96 = arith.mulf %84, %95 : vector<8x128xf32>
    %c0_40 = arith.constant 0 : index
    %c0_41 = arith.constant 0 : index
    %97 = vector.load %arg12[%c0_40, %c0_41] : memref<1x128xf32, #tpu.memory_space<vmem>>, vector<1x128xf32>
    %98 = vector.broadcast %97 : vector<1x128xf32> to vector<8x128xf32>
    %99 = arith.mulf %96, %98 : vector<8x128xf32>
    %c0_42 = arith.constant 0 : index
    %c0_43 = arith.constant 0 : index
    %100 = vector.load %arg13[%c0_42, %c0_43] : memref<1x128xf32, #tpu.memory_space<vmem>>, vector<1x128xf32>
    %101 = vector.broadcast %100 : vector<1x128xf32> to vector<8x128xf32>
    %102 = arith.addf %99, %101 : vector<8x128xf32>
    %cst_44 = arith.constant 0.00999999977 : f32
    %103 = vector.broadcast %cst_44 : f32 to vector<8x128xf32>
    %104 = arith.mulf %103, %102 : vector<8x128xf32>
    %105 = arith.maximumf %102, %104 : vector<8x128xf32>
    %106 = arith.addf %105, %73 : vector<8x128xf32>
    %107 = arith.truncf %106 : vector<8x128xf32> to vector<8x128xbf16>
    %c0_45 = arith.constant 0 : index
    %c0_46 = arith.constant 0 : index
    %108 = vector.load %arg14[%c0_45, %c0_46] : memref<128x8xbf16, #tpu.memory_space<vmem>>, vector<128x8xbf16>
    %cst_47 = arith.constant dense<0.000000e+00> : vector<8x8xf32>
    %109 = tpu.matmul %107, %108, %cst_47 {dimension_numbers = #tpu.dot_dimension_numbers<[1], [0], [0], [1], [0, 0, 1, 1], [], []>} : vector<8x128xbf16>, vector<128x8xbf16>, vector<8x8xf32> -> vector<8x8xf32>
    %c0_48 = arith.constant 0 : index
    %c0_49 = arith.constant 0 : index
    %110 = vector.load %arg15[%c0_48, %c0_49] : memref<1x8xf32, #tpu.memory_space<vmem>>, vector<1x8xf32>
    %111 = vector.broadcast %110 : vector<1x8xf32> to vector<8x8xf32>
    %112 = arith.addf %109, %111 : vector<8x8xf32>
    %113 = math.tanh %112 : vector<8x8xf32>
    %c0_50 = arith.constant 0 : index
    %c0_51 = arith.constant 0 : index
    %114 = vector.load %arg16[%c0_50, %c0_51] : memref<8x8xf32, #tpu.memory_space<vmem>>, vector<8x8xf32>
    tpu.vector_store %arg16[%c0_50, %c0_51], %113 {strides = array<i32>} : memref<8x8xf32, #tpu.memory_space<vmem>>, vector<8x8xf32>,
    return
  }
  func.func @transform_0(%arg0: i32) -> (i32, i32) {
    %c0_i32 = arith.constant 0 : i32
    %c0_i32_0 = arith.constant 0 : i32
    return %arg0, %c0_i32 : i32, i32
  }
  func.func @transform_1(%arg0: i32) -> (i32, i32) {
    %c0_i32 = arith.constant 0 : i32
    %c0_i32_0 = arith.constant 0 : i32
    %c0_i32_1 = arith.constant 0 : i32
    return %c0_i32, %c0_i32_0 : i32, i32
  }
  func.func @transform_2(%arg0: i32) -> (i32, i32) {
    %c0_i32 = arith.constant 0 : i32
    %c0_i32_0 = arith.constant 0 : i32
    %c0_i32_1 = arith.constant 0 : i32
    return %c0_i32, %c0_i32_0 : i32, i32
  }
  func.func @transform_3(%arg0: i32) -> (i32, i32) {
    %c0_i32 = arith.constant 0 : i32
    %c0_i32_0 = arith.constant 0 : i32
    %c0_i32_1 = arith.constant 0 : i32
    return %c0_i32, %c0_i32_0 : i32, i32
  }
  func.func @transform_4(%arg0: i32) -> (i32, i32) {
    %c0_i32 = arith.constant 0 : i32
    %c0_i32_0 = arith.constant 0 : i32
    %c0_i32_1 = arith.constant 0 : i32
    return %c0_i32, %c0_i32_0 : i32, i32
  }
  func.func @transform_5(%arg0: i32) -> (i32, i32) {
    %c0_i32 = arith.constant 0 : i32
    %c0_i32_0 = arith.constant 0 : i32
    %c0_i32_1 = arith.constant 0 : i32
    return %c0_i32, %c0_i32_0 : i32, i32
  }
  func.func @transform_6(%arg0: i32) -> (i32, i32) {
    %c0_i32 = arith.constant 0 : i32
    %c0_i32_0 = arith.constant 0 : i32
    %c0_i32_1 = arith.constant 0 : i32
    return %c0_i32, %c0_i32_0 : i32, i32
  }
  func.func @transform_7(%arg0: i32) -> (i32, i32) {
    %c0_i32 = arith.constant 0 : i32
    %c0_i32_0 = arith.constant 0 : i32
    %c0_i32_1 = arith.constant 0 : i32
    return %c0_i32, %c0_i32_0 : i32, i32
  }
  func.func @transform_8(%arg0: i32) -> (i32, i32) {
    %c0_i32 = arith.constant 0 : i32
    %c0_i32_0 = arith.constant 0 : i32
    %c0_i32_1 = arith.constant 0 : i32
    return %c0_i32, %c0_i32_0 : i32, i32
  }
  func.func @transform_9(%arg0: i32) -> (i32, i32) {
    %c0_i32 = arith.constant 0 : i32
    %c0_i32_0 = arith.constant 0 : i32
    %c0_i32_1 = arith.constant 0 : i32
    return %c0_i32, %c0_i32_0 : i32, i32
  }
  func.func @transform_10(%arg0: i32) -> (i32, i32) {
    %c0_i32 = arith.constant 0 : i32
    %c0_i32_0 = arith.constant 0 : i32
    %c0_i32_1 = arith.constant 0 : i32
    return %c0_i32, %c0_i32_0 : i32, i32
  }
  func.func @transform_11(%arg0: i32) -> (i32, i32) {
    %c0_i32 = arith.constant 0 : i32
    %c0_i32_0 = arith.constant 0 : i32
    %c0_i32_1 = arith.constant 0 : i32
    return %c0_i32, %c0_i32_0 : i32, i32
  }
  func.func @transform_12(%arg0: i32) -> (i32, i32) {
    %c0_i32 = arith.constant 0 : i32
    %c0_i32_0 = arith.constant 0 : i32
    %c0_i32_1 = arith.constant 0 : i32
    return %c0_i32, %c0_i32_0 : i32, i32
  }
  func.func @transform_13(%arg0: i32) -> (i32, i32) {
    %c0_i32 = arith.constant 0 : i32
    %c0_i32_0 = arith.constant 0 : i32
    %c0_i32_1 = arith.constant 0 : i32
    return %c0_i32, %c0_i32_0 : i32, i32
  }
  func.func @transform_14(%arg0: i32) -> (i32, i32) {
    %c0_i32 = arith.constant 0 : i32
    %c0_i32_0 = arith.constant 0 : i32
    %c0_i32_1 = arith.constant 0 : i32
    return %c0_i32, %c0_i32_0 : i32, i32
  }
  func.func @transform_15(%arg0: i32) -> (i32, i32) {
    %c0_i32 = arith.constant 0 : i32
    %c0_i32_0 = arith.constant 0 : i32
    return %arg0, %c0_i32 : i32, i32
  }
}

</mosaic_0001>

<bundles_post_ra>
// kernel: tpu_custom_call.1
= control target key start
LH: loop header
LB: loop body
LE: loop exit
PB: predicated region body
PF: predicated region fallthrough
CT: control target
= control target key end

     0   :  { %20 = vsyncpa [#allocation3], 0  ;;  %s1286_s0 = inlined_call_operand.vmem [shape: f32[8,32], index: 0, kind: input, shape index: {}]   ;;  %s1287_s1 = inlined_call_operand.vmem [shape: bf16[32,256], index: 1, kind: input, shape index: {}]   ;;  %s1288_s2 = inlined_call_operand.vmem [shape: f32[1,256], index: 2, kind: input, shape index: {}]   ;;  %s1289_s3 = inlined_call_operand.vmem [shape: f32[1,256], index: 3, kind: input, shape index: {}]   ;;  %s1290_s4 = inlined_call_operand.vmem [shape: f32[1,256], index: 4, kind: input, shape index: {}]   ;;  %s1291_s5 = inlined_call_operand.hbm [shape: bf16[256,256], index: 5, kind: input, shape index: {}]   ;;  %s1292_s6 = inlined_call_operand.vmem [shape: f32[1,256], index: 6, kind: input, shape index: {}]   ;;  %s1293_s7 = inlined_call_operand.vmem [shape: f32[1,128], index: 7, kind: input, shape index: {}]   ;;  %s1294_s8 = inlined_call_operand.vmem [shape: f32[1,128], index: 8, kind: input, shape index: {}]   ;;  %s1295_s9 = inlined_call_operand.hbm [shape: bf16[128,256], index: 9, kind: input, shape index: {}]   ;;  %s1296_s10 = inlined_call_operand.vmem [shape: f32[1,256], index: 10, kind: input, shape index: {}]   ;;  %s1297_s11 = inlined_call_operand.vmem [shape: f32[1,128], index: 11, kind: input, shape index: {}]   ;;  %s1298_s12 = inlined_call_operand.vmem [shape: f32[1,128], index: 12, kind: input, shape index: {}]   ;;  %s1299_s13 = inlined_call_operand.vmem [shape: bf16[128,8], index: 13, kind: input, shape index: {}]   ;;  %s1300_s14 = inlined_call_operand.vmem [shape: f32[1,8], index: 14, kind: input, shape index: {}]   ;;  %s1301_s15 = inlined_call_operand.hbm [shape: f32[8,8], index: 15, kind: output, shape index: {}]  }
   0x1   :  { %21 = vsyncpa [#allocation6], 0 }
   0x2   :  { %22 = vsyncpa [#allocation4], 0  ;;  %s1077_s18 = smov [#allocation2]   ;;  %s1005_s22 = scalar_lea.hbm %s1291_s5, 4096 }
   0x3   :  { %s38_s19 = sshll.u32 %s1077_s18, 4  ;;  %p1006_p0 = scmp.ne.s32.totalorder %s1291_s5, %s1005_s22  ;;  %s39_s19 = int_to_ptr.vmem [resolvable:$true] %s38_s19 }
   0x4   :  { %p1009_p1 = scmp.lt.u32.totalorder %s1005_s22, %s1291_s5 }
   0x6   :  { %p1011_p2 = pnand %p1009_p1, %p1006_p0 }
   0x8   :  { %1014 = shalt.err (!%p1011_p2)
}
   0x9   :  { %s1015_s27 = scalar_lea.vmem %s39_s19, 4096  ;;  %p1020_p4 = scmp.lt.s32.totalorder %s39_s19, %s39_s19 }
   0xa   :  { %p1016_p3 = scmp.ne.s32.totalorder %s39_s19, %s1015_s27  ;;  %p1021_p5 = scmp.lt.s32.totalorder %s1015_s27, %s1015_s27 }
   0xc   :  { %p1022_p6 = por %p1021_p5, %p1020_p4 }
   0xe   :  { %p1023_p7 = pnand %p1022_p6, %p1016_p3 }
  0x10   :  { %1026 = shalt.err (!%p1023_p7)
}
  0x11   :  { %s1078_s28 = smov 128   ;;  %s1079_s29 = smov 8  }
  0x12   :  { %44 = dma.hbm_to_vmem [thread:$0]  %s1291_s5, 4096, %s39_s19, [#allocation3], %s1078_s28, %s1078_s28, %s1079_s29  }
  0x13   :  { %s1080_s17 = smov [#allocation5]   ;;  %s1027_s22 = scalar_lea.hbm %s1295_s9, 2048 }
  0x14   :  { %s56_s18 = sshll.u32 %s1080_s17, 4  ;;  %p1028_p8 = scmp.ne.s32.totalorder %s1295_s9, %s1027_s22  ;;  %s57_s18 = int_to_ptr.vmem [resolvable:$true] %s56_s18 }
  0x15   :  { %p1031_p9 = scmp.lt.u32.totalorder %s1027_s22, %s1295_s9 }
  0x17   :  { %p1033_p10 = pnand %p1031_p9, %p1028_p8 }
  0x19   :  { %1036 = shalt.err (!%p1033_p10)
}
  0x1a   :  { %s1037_s27 = scalar_lea.vmem %s57_s18, 2048  ;;  %p1042_p12 = scmp.lt.s32.totalorder %s57_s18, %s57_s18 }
  0x1b   :  { %p1038_p11 = scmp.ne.s32.totalorder %s57_s18, %s1037_s27  ;;  %p1043_p13 = scmp.lt.s32.totalorder %s1037_s27, %s1037_s27 }
  0x1d   :  { %p1044_p0 = por %p1043_p13, %p1042_p12 }
  0x1f   :  { %p1045_p1 = pnand %p1044_p0, %p1038_p11 }
  0x21   :  { %1048 = shalt.err (!%p1045_p1)
}
  0x22   :  { %62 = dma.hbm_to_vmem [thread:$0]  %s1295_s9, 2048, %s57_s18, [#allocation6], %s1078_s28, %s1078_s28, %s1079_s29  }
  0x23   :  { %1071 = dma.done.wait [#allocation3], 4096  }
  0x24   :  { %1072 = vsyncadd [#allocation3], 4294963200 }
  0x25   :  { %1073 = dma.done.wait [#allocation6], 2048  }
  0x26   :  { %1074 = vsyncadd [#allocation6], 4294965248  ;;  %v1081_v0 = vmov 0   ;;  %v911_v1 = vld [vmem:[%s1287_s1 + $0x4] ss:$8 sps:$4 sm:$0xff]   ;;  %vm118_vm0 = vcmask 261120   ;;  %v88_v7 = vlaneseq }
  0x27   :  { %154 = vmatprep.mubr.bf16.mxu0 %v1081_v0  ;;  %v913_v2 = vld [vmem:[%s1287_s1] ss:$8 sps:$4 sm:$0xff]   ;;  %122 = vmatprep.subr.bf16.mxu0 %v911_v1  ;;  %v914_v3 = vld [vmem:[%s1287_s1 + $0x14] ss:$8 sps:$4 sm:$0xff]   ;;  %v916_v4 = vld [vmem:[%s1287_s1 + $0x10] ss:$8 sps:$4 sm:$0xff]  }
  0x28   :  { %123 = vmatpush1.bf16.msra.mxu0 %v913_v2  ;;  %v80_v5 = vld [vmem:[%s1286_s0] sm:$0xff]  ;;  %v89_v8 = vshrl.u32 %v88_v7, 7  ;;  %v920_v23 = vld [vmem:[#allocation2 + $0x14] ss:$8 sps:$4 sm:$0xff]   ;;  %v922_v24 = vld [vmem:[#allocation2 + $0x10] ss:$8 sps:$4 sm:$0xff]  }
  0x29   :  { %124 = vmatprep.subr.bf16.mxu0 %v914_v3  ;;  %v81_v6 = vpack.c.bf16 %v80_v5, %v80_v5  ;;  %v86_v10 = vld [vmem:[%s1288_s2] sm:$0x3]  ;;  %v917_v21 = vld [vmem:[#allocation2 + $0x4] ss:$8 sps:$4 sm:$0xff]   ;;  %v926_v27 = vld [vmem:[#allocation2 + $0x34] ss:$8 sps:$4 sm:$0xff]  }
  0x2a   :  { %v1205_v9 = vsub.s32 0, %v89_v8  ;;  %v1210_v11 = vsub.s32 1, %v89_v8  ;;  %v919_v22 = vld [vmem:[#allocation2] ss:$8 sps:$4 sm:$0xff]   ;;  %418 = vmatprep.subr.bf16.mxu1 %v917_v21  ;;  %v923_v25 = vld [vmem:[#allocation2 + $0x24] ss:$8 sps:$4 sm:$0xff]  }
  0x2b   :  { %419 = vmatpush1.bf16.msra.mxu1 %v919_v22  ;;  %v925_v26 = vld [vmem:[#allocation2 + $0x20] ss:$8 sps:$4 sm:$0xff]   ;;  %v928_v28 = vld [vmem:[#allocation2 + $0x30] ss:$8 sps:$4 sm:$0xff]   ;;  %v929_v29 = vld [vmem:[#allocation2 + $0x44] ss:$8 sps:$4 sm:$0xff]  }
  0x2c   :  { %125 = vmatpush1.bf16.msra.mxu0 %v916_v4  ;;  %v91_v12 = vrot.slane %v86_v10, %v1205_v9  ;;  %v95_v13 = vrot.slane %v86_v10, %v1210_v11  ;;  %420 = vmatprep.subr.bf16.mxu1 %v920_v23  ;;  %v931_v30 = vld [vmem:[#allocation2 + $0x40] ss:$8 sps:$4 sm:$0xff]   ;;  %v932_v31 = vld [vmem:[#allocation2 + $0x54] ss:$8 sps:$4 sm:$0xff]   ;;  %v934_v32 = vld [vmem:[#allocation2 + $0x50] ss:$8 sps:$4 sm:$0xff]  }
  0x2d   :  { %v935_v33 = vld [vmem:[#allocation2 + $0x64] ss:$8 sps:$4 sm:$0xff]   ;;  %v937_v34 = vld [vmem:[#allocation2 + $0x60] ss:$8 sps:$4 sm:$0xff]   ;;  %v938_v35 = vld [vmem:[#allocation2 + $0x74] ss:$8 sps:$4 sm:$0xff]  }
  0x2e   :  { %v940_v36 = vld [vmem:[#allocation2 + $0x70] ss:$8 sps:$4 sm:$0xff]   ;;  %v941_v37 = vld [vmem:[#allocation2 + $0x84] ss:$8 sps:$4 sm:$0xff]   ;;  %v943_v38 = vld [vmem:[#allocation2 + $0x80] ss:$8 sps:$4 sm:$0xff]  }
  0x2f   :  { %811 = vmatmul.mubr.msk.bf16.vlgmr.msra.gmra.mrb[0].mxu0 %vm118_vm0, %v81_v6  ;;  %421 = vmatpush1.bf16.msra.mxu1 %v922_v24  ;;  %v944_v46 = vld [vmem:[#allocation2 + $0x94] ss:$8 sps:$4 sm:$0xff]   ;;  %v946_v47 = vld [vmem:[#allocation2 + $0x90] ss:$8 sps:$4 sm:$0xff]   ;;  %v947_v48 = vld [vmem:[#allocation2 + $0xa4] ss:$8 sps:$4 sm:$0xff]  }
  0x30   :  { %631 = vmatprep.mubr.bf16.mxu0 %v1081_v0  ;;  %422 = vmatprep.subr.bf16.mxu1 %v923_v25  ;;  %v949_v49 = vld [vmem:[#allocation2 + $0xa0] ss:$8 sps:$4 sm:$0xff]   ;;  %v950_v50 = vld [vmem:[#allocation2 + $0xb4] ss:$8 sps:$4 sm:$0xff]   ;;  %v952_v51 = vld [vmem:[#allocation2 + $0xb0] ss:$8 sps:$4 sm:$0xff]  }
  0x31   :  { %v953_v52 = vld [vmem:[#allocation2 + $0xc4] ss:$8 sps:$4 sm:$0xff]   ;;  %v955_v53 = vld [vmem:[#allocation2 + $0xc0] ss:$8 sps:$4 sm:$0xff]   ;;  %v956_v54 = vld [vmem:[#allocation2 + $0xd4] ss:$8 sps:$4 sm:$0xff]  }
  0x32   :  { %v958_v55 = vld [vmem:[#allocation2 + $0xd0] ss:$8 sps:$4 sm:$0xff]   ;;  %v959_v56 = vld [vmem:[#allocation2 + $0xe4] ss:$8 sps:$4 sm:$0xff]   ;;  %v961_v57 = vld [vmem:[#allocation2 + $0xe0] ss:$8 sps:$4 sm:$0xff]  }
  0x33   :  { %423 = vmatpush1.bf16.msra.mxu1 %v925_v26  ;;  %v962_v58 = vld [vmem:[#allocation2 + $0xf4] ss:$8 sps:$4 sm:$0xff]   ;;  %v964_v59 = vld [vmem:[#allocation2 + $0xf0] ss:$8 sps:$4 sm:$0xff]   ;;  %v163_v63 = vld [vmem:[%s1289_s3] sm:$0x3] }
  0x34   :  { %424 = vmatprep.subr.bf16.mxu1 %v926_v27  ;;  %v164_v0 = vld [vmem:[%s1290_s4] sm:$0x3]  ;;  %v186_v1 = vrot.slane %v163_v63, %v1205_v9  ;;  %v190_v2 = vrot.slane %v163_v63, %v1210_v11  ;;  %vm1083_vm2 = vmmov 0   ;;  %vm789_vm3 = vcmask 64512  }
  0x35   :  { %v199_v5 = vrot.slane %v164_v0, %v1205_v9  ;;  %v203_v6 = vrot.slane %v164_v0, %v1210_v11  ;;  %v246_v21 = vld [vmem:[%s1292_s6] sm:$0x3] }
  0x36   :  { %v251_v22 = vrot.slane %v246_v21, %v1205_v9  ;;  %v507_v63 = vld [vmem:[%s1296_s10] sm:$0x3] }
  0x37   :  { %425 = vmatpush1.bf16.msra.mxu1 %v928_v28  ;;  %v965_v28 = vld [vmem:[#allocation5] ss:$8 sps:$4 sm:$0xff]   ;;  %v512_v0 = vrot.slane %v507_v63, %v1205_v9 }
  0x38   :  { %426 = vmatprep.subr.bf16.mxu1 %v929_v29  ;;  %v967_v29 = vld [vmem:[#allocation5 + $0x4] ss:$8 sps:$4 sm:$0xff]  }
  0x39   :  { %599 = vmatprep.subr.bf16.mxu0 %v967_v29  ;;  %v864_v29 = vld [vmem:[%s1298_s12] ss:$0 sm:$0xff] }
  0x3a   :  { %600 = vmatpush1.bf16.msra.mxu0 %v965_v28 }
  0x3b   :  { %427 = vmatpush1.bf16.msra.mxu1 %v931_v30 }
  0x3c   :  { %428 = vmatprep.subr.bf16.mxu1 %v932_v31 }
  0x3f   :  { %429 = vmatpush1.bf16.msra.mxu1 %v934_v32 }
  0x40   :  { %430 = vmatprep.subr.bf16.mxu1 %v935_v33 }
  0x43   :  { %431 = vmatpush1.bf16.msra.mxu1 %v937_v34  ;;  %v970_v34 = vld [vmem:[#allocation5 + $0x14] ss:$8 sps:$4 sm:$0xff]  }
  0x44   :  { %432 = vmatprep.subr.bf16.mxu1 %v938_v35  ;;  %v968_v35 = vld [vmem:[#allocation5 + $0x10] ss:$8 sps:$4 sm:$0xff]   ;;  %601 = vmatprep.subr.bf16.mxu0 %v970_v34 }
  0x45   :  { %602 = vmatpush1.bf16.msra.mxu0 %v968_v35 }
  0x47   :  { %433 = vmatpush1.bf16.msra.mxu1 %v940_v36  ;;  %v973_v36 = vld [vmem:[#allocation5 + $0x24] ss:$8 sps:$4 sm:$0xff]  }
  0x48   :  { %434 = vmatprep.subr.bf16.mxu1 %v941_v37  ;;  %v971_v37 = vld [vmem:[#allocation5 + $0x20] ss:$8 sps:$4 sm:$0xff]   ;;  %603 = vmatprep.subr.bf16.mxu0 %v973_v36 }
  0x49   :  { %604 = vmatpush1.bf16.msra.mxu0 %v971_v37 }
  0x4b   :  { %435 = vmatpush1.bf16.msra.mxu1 %v943_v38  ;;  %v976_v38 = vld [vmem:[#allocation5 + $0x34] ss:$8 sps:$4 sm:$0xff]  }
  0x4c   :  { %436 = vmatprep.subr.bf16.mxu1 %v944_v46  ;;  %605 = vmatprep.subr.bf16.mxu0 %v976_v38  ;;  %v988_v46 = vld [vmem:[#allocation5 + $0x74] ss:$8 sps:$4 sm:$0xff]   ;;  %v865_v38 = vld [vmem:[%s1300_s14] ss:$0 sm:$0xff] }
  0x4f   :  { %437 = vmatpush1.bf16.msra.mxu1 %v946_v47  ;;  %v986_v47 = vld [vmem:[#allocation5 + $0x70] ss:$8 sps:$4 sm:$0xff]  }
  0x50   :  { %438 = vmatprep.subr.bf16.mxu1 %v947_v48 }
  0x53   :  { %439 = vmatpush1.bf16.msra.mxu1 %v949_v49 }
  0x54   :  { %440 = vmatprep.subr.bf16.mxu1 %v950_v50 }
  0x57   :  { %441 = vmatpush1.bf16.msra.mxu1 %v952_v51 }
  0x58   :  { %442 = vmatprep.subr.bf16.mxu1 %v953_v52  ;;  %v844_v52 = vld [vmem:[%s1293_s7] ss:$0 sm:$0xff] }
  0x5b   :  { %443 = vmatpush1.bf16.msra.mxu1 %v955_v53 }
  0x5c   :  { %444 = vmatprep.subr.bf16.mxu1 %v956_v54  ;;  %v845_v54 = vld [vmem:[%s1294_s8] ss:$0 sm:$0xff] }
  0x5f   :  { %445 = vmatpush1.bf16.msra.mxu1 %v958_v55 }
  0x60   :  { %446 = vmatprep.subr.bf16.mxu1 %v959_v56  ;;  %v255_v56 = vrot.slane %v246_v21, %v1210_v11  ;;  %v995_v21 = vld [vmem:[%s1299_s13 + $0x30] sm:$0xff]  }
  0x63   :  { %447 = vmatpush1.bf16.msra.mxu1 %v961_v57 }
  0x64   :  { %448 = vmatprep.subr.bf16.mxu1 %v962_v58 }
  0x67   :  { %449 = vmatpush1.bf16.msra.mxu1 %v964_v59 }
 0x102   :  { %v156_v14 = vpop.f32.mrb[0].mxu0 }
 0x103   :  { %v157_v15 = vadd.f32 %v156_v14, %v91_v12  ;;  %v158_v16 = vpop.f32.mrb[1].mxu0 }
 0x104   :  { %v159_v17 = vadd.f32 %v158_v16, %v95_v13  ;;  %v160_v18 = vpop.f32.mrb[2].mxu0 }
 0x105   :  { %v161_v19 = vpop.f32.mrb[3].mxu0 }
 0x106   :  { %v165_v20 = vadd.f32 %v159_v17, %v157_v15 }
 0x108   :  { %166 = vadd.xlane.f32.xlu0 %v165_v20 }
 0x195   :  { %v167_v39 = vpop.xlane.xlu0 %166 }
 0x196   :  { %v169_v40 = vmul.f32 0.00390625, %v167_v39  ;;  %v974_v39 = vld [vmem:[#allocation5 + $0x30] ss:$8 sps:$4 sm:$0xff]  }
 0x197   :  { %606 = vmatpush1.bf16.msra.mxu0 %v974_v39 }
 0x198   :  { %v170_v41 = vsub.f32 %v157_v15, %v169_v40  ;;  %v171_v42 = vsub.f32 %v159_v17, %v169_v40  ;;  %v979_v40 = vld [vmem:[#allocation5 + $0x44] ss:$8 sps:$4 sm:$0xff]  }
 0x199   :  { %607 = vmatprep.subr.bf16.mxu0 %v979_v40 }
 0x19a   :  { %v172_v43 = vmul.f32 %v170_v41, %v170_v41  ;;  %v173_v44 = vmul.f32 %v171_v42, %v171_v42 }
 0x19c   :  { %v174_v45 = vadd.f32 %v173_v44, %v172_v43  ;;  %v982_v43 = vld [vmem:[#allocation5 + $0x54] ss:$8 sps:$4 sm:$0xff]   ;;  %v985_v44 = vld [vmem:[#allocation5 + $0x64] ss:$8 sps:$4 sm:$0xff]  }
 0x19e   :  { %175 = vadd.xlane.f32.xlu0 %v174_v45  ;;  %v983_v45 = vld [vmem:[#allocation5 + $0x60] ss:$8 sps:$4 sm:$0xff]  }
 0x22b   :  { %v176_v60 = vpop.xlane.xlu0 %175 }
 0x22c   :  { %v177_v61 = vmul.f32 0.00390625, %v176_v60 }
 0x22e   :  { %v178_v62 = vadd.f32 1e-05, %v177_v61 }
 0x230   :  { %997 = vrsqrt.f32 %v178_v62 }
 0x23a   :  { %v998_v3 = vpop.eup %997 }
 0x23b   :  { %v181_v4 = vmul.f32 %v998_v3, %v171_v42  ;;  %v180_v8 = vmul.f32 %v998_v3, %v170_v41  ;;  %v977_v41 = vld [vmem:[#allocation5 + $0x40] ss:$8 sps:$4 sm:$0xff]   ;;  %v980_v42 = vld [vmem:[#allocation5 + $0x50] ss:$8 sps:$4 sm:$0xff]  }
 0x23c   :  { %608 = vmatpush1.bf16.msra.mxu0 %v977_v41 }
 0x23d   :  { %v194_v10 = vmul.f32 %v190_v2, %v181_v4  ;;  %v193_v12 = vmul.f32 %v186_v1, %v180_v8  ;;  %609 = vmatprep.subr.bf16.mxu0 %v982_v43  ;;  %v989_v8 = vld [vmem:[%s1299_s13] sm:$0xff]  }
 0x23f   :  { %v207_v13 = vadd.f32 %v203_v6, %v194_v10  ;;  %v206_v14 = vadd.f32 %v199_v5, %v193_v12  ;;  %v1082_v6 = vmov 0.0   ;;  %v641_v10 = vand.u32 127, %v88_v7  ;;  %v992_v7 = vld [vmem:[%s1299_s13 + $0x18] sm:$0xff]  }
 0x240   :  { %610 = vmatpush1.bf16.msra.mxu0 %v980_v42 }
 0x241   :  { %v209_v15 = vmul.f32 0.01, %v207_v13  ;;  %v208_v16 = vmul.f32 0.01, %v206_v14  ;;  %611 = vmatprep.subr.bf16.mxu0 %v985_v44  ;;  %vm642_vm1 = vcmp.lt.s32.totalorder %v641_v10, 64 }
 0x242   :  { %v862_v9 = vsel %vm642_vm1, 1.0, %v1082_v6 }
 0x243   :  { %v211_v17 = vmax.f32 %v207_v13, %v209_v15  ;;  %v210_v18 = vmax.f32 %v206_v14, %v208_v16 }
 0x244   :  { %612 = vmatpush1.bf16.msra.mxu0 %v983_v45 }
 0x245   :  { %v213_v19 = vpack.c.bf16 %v211_v17, %v211_v17  ;;  %v212_v20 = vpack.c.bf16 %v210_v18, %v210_v18  ;;  %613 = vmatprep.subr.bf16.mxu0 %v988_v46  ;;  %v990_v17 = vld [vmem:[%s1299_s13 + $0x8] sm:$0xff]   ;;  %v991_v18 = vld [vmem:[%s1299_s13 + $0x10] sm:$0xff]  }
 0x247   :  { %450 = vmatprep.mubr.bf16.mxu1 %v213_v19  ;;  %v993_v19 = vld [vmem:[%s1299_s13 + $0x20] sm:$0xff]  }
 0x248   :  { %451 = vmatmul.mubr.bf16.vlgmr.msra.gmra.mrb[0].mxu1 %v212_v20  ;;  %614 = vmatpush1.bf16.msra.mxu0 %v986_v47  ;;  %v994_v20 = vld [vmem:[%s1299_s13 + $0x28] sm:$0xff]  }
 0x249   :  { %883 = vmatprep.subr.bf16.mxu0 %v1082_v6 }
 0x31b   :  { %v452_v23 = vpop.f32.mrb[0].mxu1 }
 0x31c   :  { %v453_v24 = vadd.f32 %v452_v23, %v251_v22  ;;  %v454_v25 = vpop.f32.mrb[1].mxu1  ;;  %v996_v22 = vld [vmem:[%s1299_s13 + $0x38] sm:$0xff]  }
 0x31d   :  { %v456_v26 = vpop.f32.mrb[2].mxu1  ;;  %v455_v59 = vadd.f32 %v454_v25, %v255_v56 }
 0x31e   :  { %v457_v27 = vpop.f32.mrb[3].mxu1  ;;  %461 = vadd.xlane.f32.xlu1 %v453_v24 }
 0x31f   :  { %v863_v27 = vld [vmem:[%s1297_s11] ss:$0 sm:$0xff]  ;;  %s1084_s11 = smov [#allocation7]  }
 0x320   :  { %s797_s12 = sshll.u32 %s1084_s11, 4  ;;  %s798_s12 = int_to_ptr.vmem [resolvable:$true] %s797_s12 }
 0x321   :  { %s1049_s26 = scalar_lea.vmem %s798_s12, 128  ;;  %p1054_p3 = scmp.lt.s32.totalorder %s798_s12, %s798_s12 }
 0x322   :  { %p1050_p2 = scmp.ne.s32.totalorder %s798_s12, %s1049_s26  ;;  %p1055_p4 = scmp.lt.s32.totalorder %s1049_s26, %s1049_s26 }
 0x324   :  { %p1056_p5 = por %p1055_p4, %p1054_p3 }
 0x326   :  { %p1057_p6 = pnand %p1056_p5, %p1050_p2 }
 0x3ab   :  { %v462_v30 = vpop.xlane.xlu1 %461 }
 0x3ac   :  { %v464_v31 = vmul.f32 0.0078125, %v462_v30 }
 0x3ae   :  { %v465_v32 = vsub.f32 %v453_v24, %v464_v31  ;;  %v516_v31 = vrot.slane %v507_v63, %v1210_v11 }
 0x3b0   :  { %v466_v33 = vmul.f32 %v465_v32, %v465_v32 }
 0x3b2   :  { %467 = vadd.xlane.f32.xlu1 %v466_v33 }
 0x43f   :  { %v468_v48 = vpop.xlane.xlu1 %467 }
 0x440   :  { %v469_v49 = vmul.f32 0.0078125, %v468_v48 }
 0x442   :  { %v470_v50 = vadd.f32 1e-05, %v469_v49 }
 0x444   :  { %999 = vrsqrt.f32 %v470_v50 }
 0x44e   :  { %v1000_v51 = vpop.eup %999 }
 0x44f   :  { %v472_v53 = vmul.f32 %v1000_v51, %v465_v32 }
 0x451   :  { %v479_v55 = vmul.f32 %v844_v52, %v472_v53 }
 0x453   :  { %v486_v57 = vadd.f32 %v845_v54, %v479_v55 }
 0x455   :  { %v487_v58 = vmul.f32 0.01, %v486_v57 }
 0x457   :  { %v488_v60 = vmax.f32 %v486_v57, %v487_v58 }
 0x459   :  { %v489_v61 = vadd.f32 %v488_v60, %v455_v59 }
 0x45b   :  { %v490_v62 = vpack.c.bf16 %v489_v61, %v489_v61 }
 0x45d   :  { %632 = vmatmul.mubr.bf16.vlgmr.msra.gmra.mrb[4].mxu0 %v490_v62 }
 0x45e   :  { %884 = vmatpush3.bf16.msra.mxu0 %v989_v8  ;;  %899 = vmatprep.mubr.msk.bf16.mxu0 %vm1083_vm2, %v1082_v6 }
 0x45f   :  { %885 = vmatprep.subr.bf16.mxu0 %v1082_v6 }
 0x462   :  { %886 = vmatpush3.bf16.msra.mxu0 %v990_v17 }
 0x463   :  { %887 = vmatprep.subr.bf16.mxu0 %v1082_v6 }
 0x466   :  { %888 = vmatpush3.bf16.msra.mxu0 %v991_v18 }
 0x467   :  { %889 = vmatprep.subr.bf16.mxu0 %v1082_v6 }
 0x46a   :  { %890 = vmatpush3.bf16.msra.mxu0 %v992_v7 }
 0x46b   :  { %891 = vmatprep.subr.bf16.mxu0 %v1082_v6 }
 0x46e   :  { %892 = vmatpush3.bf16.msra.mxu0 %v993_v19 }
 0x46f   :  { %893 = vmatprep.subr.bf16.mxu0 %v1082_v6 }
 0x472   :  { %894 = vmatpush3.bf16.msra.mxu0 %v994_v20 }
 0x473   :  { %895 = vmatprep.subr.bf16.mxu0 %v1082_v6 }
 0x476   :  { %896 = vmatpush3.bf16.msra.mxu0 %v995_v21 }
 0x477   :  { %897 = vmatprep.subr.bf16.mxu0 %v1082_v6 }
 0x47a   :  { %898 = vmatpush3.bf16.msra.mxu0 %v996_v22 }
 0x530   :  { %v633_v1 = vpop.f32.mrb[4].mxu0 }
 0x531   :  { %v634_v2 = vadd.f32 %v633_v1, %v512_v0  ;;  %v635_v3 = vpop.f32.mrb[5].mxu0 }
 0x532   :  { %v637_v4 = vpop.f32.mrb[6].mxu0  ;;  %v636_v34 = vadd.f32 %v635_v3, %v516_v31 }
 0x533   :  { %v638_v5 = vpop.f32.mrb[7].mxu0  ;;  %645 = vadd.xlane.f32.xlu0 %v634_v2 }
 0x5c0   :  { %v646_v12 = vpop.xlane.xlu0 %645 }
 0x5c1   :  { %v647_v13 = vmul.f32 0.015625, %v646_v12 }
 0x5c3   :  { %v648_v14 = vsub.f32 %v634_v2, %v647_v13 }
 0x5c5   :  { %v649_v15 = vmul.f32 %v862_v9, %v648_v14 }
 0x5c7   :  { %v650_v16 = vmul.f32 %v649_v15, %v649_v15 }
 0x5c9   :  { %651 = vadd.xlane.f32.xlu1 %v650_v16 }
 0x656   :  { %v652_v23 = vpop.xlane.xlu1 %651 }
 0x657   :  { %v653_v24 = vmul.f32 0.015625, %v652_v23 }
 0x659   :  { %v654_v25 = vadd.f32 1e-05, %v653_v24 }
 0x65b   :  { %1001 = vrsqrt.f32 %v654_v25 }
 0x665   :  { %v1002_v26 = vpop.eup %1001 }
 0x666   :  { %v656_v28 = vmul.f32 %v1002_v26, %v648_v14 }
 0x668   :  { %v664_v30 = vmul.f32 %v863_v27, %v656_v28 }
 0x66a   :  { %v672_v32 = vadd.f32 %v864_v29, %v664_v30 }
 0x66c   :  { %v673_v33 = vmul.f32 0.01, %v672_v32 }
 0x66e   :  { %v674_v35 = vmax.f32 %v672_v32, %v673_v33 }
 0x670   :  { %v675_v36 = vadd.f32 %v674_v35, %v636_v34 }
 0x672   :  { %v676_v37 = vpack.c.bf16 %v675_v36, %v675_v36 }
 0x674   :  { %900 = vmatmul.mubr.bf16.vlgmr.msra.gmra.mrb[8].mxu0 %v676_v37 }
 0x747   :  { %v782_v39 = vpop.f32.mrb[8].mxu0 }
 0x748   :  { %v783_v40 = vadd.f32 %v865_v38, %v782_v39  ;;  %v901_v41 = vpop.f32.mrb[9].mxu0 }
 0x749   :  { %v785_v42 = vpop.f32.mrb[10].mxu0 }
 0x74a   :  { %1003 = vtanh.f32 %v783_v40  ;;  %v902_v43 = vpop.f32.mrb[11].mxu0 }
 0x754   :  { %v1004_v11 = vpop.eup %1003 }
 0x755   :  { %790 = vst.msk [vmem:[#allocation7] sm:$0xff] %vm789_vm3, %v1004_v11 }
 0x756   :  { %1060 = shalt.err (!%p1057_p6)
}
 0x757   :  { %s1061_s5 = scalar_lea.hbm %s1301_s15, 128 }
 0x758   :  { %p1062_p7 = scmp.ne.s32.totalorder %s1301_s15, %s1061_s5  ;;  %p1065_p8 = scmp.lt.u32.totalorder %s1061_s5, %s1301_s15 }
 0x75a   :  { %p1067_p9 = pnand %p1065_p8, %p1062_p7 }
 0x75c   :  { %1070 = shalt.err (!%p1067_p9)
}
 0x75d   :  { %800 = dma.vmem_to_hbm [thread:$0]  %s798_s12, 128, %s1301_s15, [#allocation4]  }
 0x75e   :  { %1075 = dma.done.wait [#allocation4], 128  }
 0x75f   :  { %1076 = vsyncadd [#allocation4], 4294967168 }
 0x760   :  { %804 = vsyncpa [#allocation3], 1 }
 0x761   :  { %805 = vsyncpa [#allocation6], 1 }
 0x762   :  { %806 = vsyncpa [#allocation4], 1 }

</bundles_post_ra>
